<compile_context>
chip_gen: v6e
topology: v6e:2x2x1
jax: 0.10.0
libtpu: 0.0.40
codegen_flags: <defaults>
</compile_context>

<pallas_src>
import functools

import jax
import jax.numpy as jnp
from jax.experimental import pallas as pl
from jax.experimental.pallas import tpu as pltpu


def _relu(v):
    return jnp.maximum(v, 0.0)


def _round_up(n, m):
    return (n + m - 1) // m * m


def _kcsi_kernel(x_ref,
                 w1_ref, b1_ref,
                 w2_ref, b2_ref,
                 w3_ref, b3_ref,
                 w4_ref, b4_ref,
                 wp_ref,
                 o_ref,
                 *, activation, predict_with_sigmoid, compute_dtype):
    # x tile is batch-major (bt, in_features); weights are (out, in) torch layout.
    x = x_ref[...].astype(compute_dtype)

    # Layer 1: contract W1 dim 1 with x dim 1 -> feature-major (channel, bt).
    dn_t = (((1,), (1,)), ((), ()))
    y1 = jax.lax.dot_general(w1_ref[...], x, dn_t,
                             preferred_element_type=jnp.float32)
    res1_c = activation(y1 + b1_ref[...]).astype(compute_dtype)   # bf16 skip operand

    def dense(w_ref, b_ref, a):
        # (out, k) @ (k, bt) -> f32 (out, bt); per-row bias broadcast along lanes.
        y = jnp.dot(w_ref[...], a, preferred_element_type=jnp.float32)
        return y + b_ref[...]

    res2_c = activation(dense(w2_ref, b2_ref, res1_c)).astype(compute_dtype)
    res3_c = activation(dense(w3_ref, b3_ref, res2_c) + res1_c).astype(compute_dtype)
    mlp1 = activation(dense(w4_ref, b4_ref, res3_c))              # (mid, bt) f32

    # Final (mid_channel -> 1) layer: VPU multiply + XLU sublane reduction,
    # producing a lane-dense (1, bt) row of logits (batch on lanes).
    logit = jnp.sum(mlp1 * wp_ref[...], axis=0, keepdims=True)

    out = jax.nn.sigmoid(logit) if predict_with_sigmoid else activation(logit)
    o_ref[...] = out.astype(o_ref.dtype)


def kcsi_discriminator_forward(x, params, *, batch_tile=None,
                               compute_dtype=jnp.bfloat16,
                               activation=_relu,
                               predict_with_sigmoid=True):
    """x: [B, in_features] f32.  params in PyTorch nn.Linear layout (out, in).
    Returns [B, 1] f32."""
    w1, b1, w2, b2, w3, b3, w4, b4, wp = params
    B, in_features = x.shape
    channel = w1.shape[0]
    mid_channel = w4.shape[0]

    # ---- batch tile selection ----------------------------------------------
    b_aligned = _round_up(B, 128)
    if batch_tile is None:
        # Big tiles amortize per-step overhead; keep >= 2 grid steps when the
        # batch allows it so ("parallel",) can shard across v7x's two cores.
        batch_tile = min(2048, max(128, _round_up(pl.cdiv(b_aligned, 2), 128)))
    batch_tile = max(128, _round_up(batch_tile, 128))

    # Conservative per-step VMEM estimate (bytes per batch column): double-
    # buffered f32 x tile + bf16 cast + ~4 live f32 (channel, bt) intermediates
    # + bf16 copies + mlp1/logit.  Cap so it also fits v5e's 16 MiB default.
    bytes_per_col = 10 * in_features + 24 * channel + 6 * mid_channel + 16
    vmem_budget = 10 * (1 << 20)
    max_tile = max(128, (vmem_budget // max(bytes_per_col, 1)) // 128 * 128)
    batch_tile = min(batch_tile, max_tile)

    b_pad = _round_up(max(B, batch_tile), batch_tile)
    num_tiles = b_pad // batch_tile

    f32 = jnp.float32

    def as_w(w):
        return w.astype(f32).astype(compute_dtype)          # bf16 MXU operand

    def as_b(b):
        return b.astype(f32).reshape(-1, 1)                 # (out, 1) f32 column

    w1k, w2k, w3k, w4k = as_w(w1), as_w(w2), as_w(w3), as_w(w4)
    b1k, b2k, b3k, b4k = as_b(b1), as_b(b2), as_b(b3), as_b(b4)
    wpk = wp.astype(f32).reshape(-1, 1)                      # (mid, 1) f32, VPU use

    # Batch-major input; only the batch dim is padded.  No host transpose, no
    # feature padding, no dtype conversion of the large input in HBM.
    xk = x if b_pad == B else jnp.pad(x, ((0, b_pad - B), (0, 0)))

    kernel = functools.partial(_kcsi_kernel,
                               activation=activation,
                               predict_with_sigmoid=predict_with_sigmoid,
                               compute_dtype=compute_dtype)

    def rep(shape):
        return pl.BlockSpec(shape, lambda i: (0, 0))         # resident block

    in_specs = [
        pl.BlockSpec((batch_tile, in_features), lambda i: (i, 0)),  # x tile
        rep((channel, in_features)), rep((channel, 1)),             # residual_layer_1
        rep((channel, channel)), rep((channel, 1)),                 # residual_layer_2
        rep((channel, channel)), rep((channel, 1)),                 # residual_layer_3
        rep((mid_channel, channel)), rep((mid_channel, 1)),         # mlp_layer_1
        rep((mid_channel, 1)),                                      # mlp_layer_pred
    ]
    out_specs = pl.BlockSpec((1, batch_tile), lambda i: (0, i))     # lane-dense row

    out_row = pl.pallas_call(
        kernel,
        out_shape=jax.ShapeDtypeStruct((1, b_pad), jnp.float32),
        grid_spec=pltpu.PrefetchScalarGridSpec(
            num_scalar_prefetch=0,
            grid=(num_tiles,),
            in_specs=in_specs,
            out_specs=out_specs,
        ),
        compiler_params=pltpu.CompilerParams(
            dimension_semantics=("parallel",)),
    )(xk, w1k, b1k, w2k, b2k, w3k, b3k, w4k, b4k, wpk)

    return out_row[0, :B].reshape(B, 1)


def init_params(key, in_features, channel, mid_channel):
    """Deterministic synthetic params in PyTorch nn.Linear layout (out, in)."""
    ks = jax.random.split(key, 9)
    scale = 0.05
    w1 = scale * jax.random.normal(ks[0], (channel, in_features), jnp.float32)
    b1 = scale * jax.random.normal(ks[1], (channel,), jnp.float32)
    w2 = scale * jax.random.normal(ks[2], (channel, channel), jnp.float32)
    b2 = scale * jax.random.normal(ks[3], (channel,), jnp.float32)
    w3 = scale * jax.random.normal(ks[4], (channel, channel), jnp.float32)
    b3 = scale * jax.random.normal(ks[5], (channel,), jnp.float32)
    w4 = scale * jax.random.normal(ks[6], (mid_channel, channel), jnp.float32)
    b4 = scale * jax.random.normal(ks[7], (mid_channel,), jnp.float32)
    wp = scale * jax.random.normal(ks[8], (1, mid_channel), jnp.float32)
    return (w1, b1, w2, b2, w3, b3, w4, b4, wp)


def reference_forward(x, params, activation=_relu, predict_with_sigmoid=True):
    """Plain-JAX f32 reference mirroring the torch forward."""
    w1, b1, w2, b2, w3, b3, w4, b4, wp = params
    res1 = activation(x @ w1.T + b1)
    res2 = activation(res1 @ w2.T + b2)
    res3 = activation(res2 @ w3.T + b3 + res1)
    mlp1 = activation(res3 @ w4.T + b4)
    pred = mlp1 @ wp.T
    return jax.nn.sigmoid(pred) if predict_with_sigmoid else activation(pred)


if __name__ == "__main__":
    key = jax.random.PRNGKey(0)
    k_x, k_p, k_x2 = jax.random.split(key, 3)

    B, in_features, channel, mid_channel = 256, 32, 64, 32
    x = jax.random.normal(k_x, (B, in_features), jnp.float32)
    params = init_params(k_p, in_features, channel, mid_channel)

    # Default tile -> 128 here, so grid=(2,) (exercises the multi-step / two-TC path).
    out = jax.block_until_ready(kcsi_discriminator_forward(x, params))
    ref = reference_forward(x, params)
    assert out.shape == (B, 1), out.shape
    err = float(jnp.max(jnp.abs(out - ref)))
    assert err < 2e-2, f"mismatch vs reference, max abs err = {err}"

    # Non-128-aligned batch (exercises the batch zero-padding path).
    B2 = 50
    x2 = jax.random.normal(k_x2, (B2, in_features), jnp.float32)
    out2 = jax.block_until_ready(kcsi_discriminator_forward(x2, params))
    ref2 = reference_forward(x2, params)
    assert out2.shape == (B2, 1), out2.shape
    err2 = float(jnp.max(jnp.abs(out2 - ref2)))
    assert err2 < 2e-2, f"mismatch vs reference (padded batch), max abs err = {err2}"

    print("KERNEL_OK")
</pallas_src>

<mosaic_0001>
module attributes {stable_mosaic.version = 11 : i64} {
  func.func @_kcsi_kernel(%arg0: i32, %arg1: memref<128x32xf32, #tpu.memory_space<vmem>>, %arg2: memref<64x32xbf16, #tpu.memory_space<vmem>>, %arg3: memref<64x1xf32, #tpu.memory_space<vmem>>, %arg4: memref<64x64xbf16, #tpu.memory_space<vmem>>, %arg5: memref<64x1xf32, #tpu.memory_space<vmem>>, %arg6: memref<64x64xbf16, #tpu.memory_space<vmem>>, %arg7: memref<64x1xf32, #tpu.memory_space<vmem>>, %arg8: memref<32x64xbf16, #tpu.memory_space<vmem>>, %arg9: memref<32x1xf32, #tpu.memory_space<vmem>>, %arg10: memref<32x1xf32, #tpu.memory_space<vmem>>, %arg11: memref<1x128xf32, #tpu.memory_space<vmem>>) attributes {dimension_semantics = [#tpu.dimension_semantics<parallel>], iteration_bounds = array<i64: 2>, scalar_prefetch = 0 : i64, scratch_operands = 0 : i64, tpu.core_type = #tpu.core_type<tc>, window_params = [{transform_indices = @transform_0, window_bounds = array<i64: 128, 32>}, {pipeline_mode = #tpu.pipeline_mode<synchronous>, transform_indices = @transform_1, window_bounds = array<i64: 64, 32>}, {pipeline_mode = #tpu.pipeline_mode<synchronous>, transform_indices = @transform_2, window_bounds = array<i64: 64, 1>}, {pipeline_mode = #tpu.pipeline_mode<synchronous>, transform_indices = @transform_3, window_bounds = array<i64: 64, 64>}, {pipeline_mode = #tpu.pipeline_mode<synchronous>, transform_indices = @transform_4, window_bounds = array<i64: 64, 1>}, {pipeline_mode = #tpu.pipeline_mode<synchronous>, transform_indices = @transform_5, window_bounds = array<i64: 64, 64>}, {pipeline_mode = #tpu.pipeline_mode<synchronous>, transform_indices = @transform_6, window_bounds = array<i64: 64, 1>}, {pipeline_mode = #tpu.pipeline_mode<synchronous>, transform_indices = @transform_7, window_bounds = array<i64: 32, 64>}, {pipeline_mode = #tpu.pipeline_mode<synchronous>, transform_indices = @transform_8, window_bounds = array<i64: 32, 1>}, {pipeline_mode = #tpu.pipeline_mode<synchronous>, transform_indices = @transform_9, window_bounds = array<i64: 32, 1>}, {transform_indices = @transform_10, window_bounds = array<i64: 1, 128>}]} {
    %c0 = arith.constant 0 : index
    %c0_0 = arith.constant 0 : index
    %0 = vector.load %arg1[%c0, %c0_0] : memref<128x32xf32, #tpu.memory_space<vmem>>, vector<128x32xf32>
    %1 = arith.truncf %0 : vector<128x32xf32> to vector<128x32xbf16>
    %c0_1 = arith.constant 0 : index
    %c0_2 = arith.constant 0 : index
    %2 = vector.load %arg2[%c0_1, %c0_2] : memref<64x32xbf16, #tpu.memory_space<vmem>>, vector<64x32xbf16>
    %cst = arith.constant dense<0.000000e+00> : vector<64x128xf32>
    %3 = tpu.matmul %2, %1, %cst {dimension_numbers = #tpu.dot_dimension_numbers<[1], [1], [0], [0], [0, 0, 1, 0], [], []>} : vector<64x32xbf16>, vector<128x32xbf16>, vector<64x128xf32> -> vector<64x128xf32>
    %c0_3 = arith.constant 0 : index
    %c0_4 = arith.constant 0 : index
    %4 = vector.load %arg3[%c0_3, %c0_4] : memref<64x1xf32, #tpu.memory_space<vmem>>, vector<64x1xf32>
    %5 = vector.broadcast %4 : vector<64x1xf32> to vector<64x128xf32>
    %6 = arith.addf %3, %5 : vector<64x128xf32>
    %cst_5 = arith.constant 0.000000e+00 : f32
    %7 = vector.broadcast %cst_5 : f32 to vector<64x128xf32>
    %8 = arith.maximumf %6, %7 : vector<64x128xf32>
    %9 = arith.truncf %8 : vector<64x128xf32> to vector<64x128xbf16>
    %c0_6 = arith.constant 0 : index
    %c0_7 = arith.constant 0 : index
    %10 = vector.load %arg4[%c0_6, %c0_7] : memref<64x64xbf16, #tpu.memory_space<vmem>>, vector<64x64xbf16>
    %cst_8 = arith.constant dense<0.000000e+00> : vector<64x128xf32>
    %11 = tpu.matmul %10, %9, %cst_8 {dimension_numbers = #tpu.dot_dimension_numbers<[1], [0], [0], [1], [0, 0, 1, 1], [], []>} : vector<64x64xbf16>, vector<64x128xbf16>, vector<64x128xf32> -> vector<64x128xf32>
    %c0_9 = arith.constant 0 : index
    %c0_10 = arith.constant 0 : index
    %12 = vector.load %arg5[%c0_9, %c0_10] : memref<64x1xf32, #tpu.memory_space<vmem>>, vector<64x1xf32>
    %13 = vector.broadcast %12 : vector<64x1xf32> to vector<64x128xf32>
    %14 = arith.addf %11, %13 : vector<64x128xf32>
    %cst_11 = arith.constant 0.000000e+00 : f32
    %15 = vector.broadcast %cst_11 : f32 to vector<64x128xf32>
    %16 = arith.maximumf %14, %15 : vector<64x128xf32>
    %17 = arith.truncf %16 : vector<64x128xf32> to vector<64x128xbf16>
    %c0_12 = arith.constant 0 : index
    %c0_13 = arith.constant 0 : index
    %18 = vector.load %arg6[%c0_12, %c0_13] : memref<64x64xbf16, #tpu.memory_space<vmem>>, vector<64x64xbf16>
    %cst_14 = arith.constant dense<0.000000e+00> : vector<64x128xf32>
    %19 = tpu.matmul %18, %17, %cst_14 {dimension_numbers = #tpu.dot_dimension_numbers<[1], [0], [0], [1], [0, 0, 1, 1], [], []>} : vector<64x64xbf16>, vector<64x128xbf16>, vector<64x128xf32> -> vector<64x128xf32>
    %c0_15 = arith.constant 0 : index
    %c0_16 = arith.constant 0 : index
    %20 = vector.load %arg7[%c0_15, %c0_16] : memref<64x1xf32, #tpu.memory_space<vmem>>, vector<64x1xf32>
    %21 = vector.broadcast %20 : vector<64x1xf32> to vector<64x128xf32>
    %22 = arith.addf %19, %21 : vector<64x128xf32>
    %23 = arith.extf %9 : vector<64x128xbf16> to vector<64x128xf32>
    %24 = arith.addf %22, %23 : vector<64x128xf32>
    %cst_17 = arith.constant 0.000000e+00 : f32
    %25 = vector.broadcast %cst_17 : f32 to vector<64x128xf32>
    %26 = arith.maximumf %24, %25 : vector<64x128xf32>
    %27 = arith.truncf %26 : vector<64x128xf32> to vector<64x128xbf16>
    %c0_18 = arith.constant 0 : index
    %c0_19 = arith.constant 0 : index
    %28 = vector.load %arg8[%c0_18, %c0_19] : memref<32x64xbf16, #tpu.memory_space<vmem>>, vector<32x64xbf16>
    %cst_20 = arith.constant dense<0.000000e+00> : vector<32x128xf32>
    %29 = tpu.matmul %28, %27, %cst_20 {dimension_numbers = #tpu.dot_dimension_numbers<[1], [0], [0], [1], [0, 0, 1, 1], [], []>} : vector<32x64xbf16>, vector<64x128xbf16>, vector<32x128xf32> -> vector<32x128xf32>
    %c0_21 = arith.constant 0 : index
    %c0_22 = arith.constant 0 : index
    %30 = vector.load %arg9[%c0_21, %c0_22] : memref<32x1xf32, #tpu.memory_space<vmem>>, vector<32x1xf32>
    %31 = vector.broadcast %30 : vector<32x1xf32> to vector<32x128xf32>
    %32 = arith.addf %29, %31 : vector<32x128xf32>
    %cst_23 = arith.constant 0.000000e+00 : f32
    %33 = vector.broadcast %cst_23 : f32 to vector<32x128xf32>
    %34 = arith.maximumf %32, %33 : vector<32x128xf32>
    %c0_24 = arith.constant 0 : index
    %c0_25 = arith.constant 0 : index
    %35 = vector.load %arg10[%c0_24, %c0_25] : memref<32x1xf32, #tpu.memory_space<vmem>>, vector<32x1xf32>
    %36 = vector.broadcast %35 : vector<32x1xf32> to vector<32x128xf32>
    %37 = arith.mulf %34, %36 : vector<32x128xf32>
    %cst_26 = arith.constant dense<0.000000e+00> : vector<128xf32>
    %38 = vector.multi_reduction <add>, %37, %cst_26 [0] : vector<32x128xf32> to vector<128xf32>
    %39 = vector.shape_cast %38 : vector<128xf32> to vector<1x128xf32>
    %40 = arith.negf %39 : vector<1x128xf32>
    %41 = math.exp %40 : vector<1x128xf32>
    %cst_27 = arith.constant 1.000000e+00 : f32
    %42 = vector.broadcast %cst_27 : f32 to vector<1x128xf32>
    %43 = arith.addf %42, %41 : vector<1x128xf32>
    %44 = arith.divf %42, %43 : vector<1x128xf32>
    %c0_28 = arith.constant 0 : index
    %c0_29 = arith.constant 0 : index
    %45 = vector.load %arg11[%c0_28, %c0_29] : memref<1x128xf32, #tpu.memory_space<vmem>>, vector<1x128xf32>
    tpu.vector_store %arg11[%c0_28, %c0_29], %44 {strides = array<i32>} : memref<1x128xf32, #tpu.memory_space<vmem>>, vector<1x128xf32>,
    return
  }
  func.func @transform_0(%arg0: i32) -> (i32, i32) {
    %c0_i32 = arith.constant 0 : i32
    %c0_i32_0 = arith.constant 0 : i32
    return %arg0, %c0_i32 : i32, i32
  }
  func.func @transform_1(%arg0: i32) -> (i32, i32) {
    %c0_i32 = arith.constant 0 : i32
    %c0_i32_0 = arith.constant 0 : i32
    %c0_i32_1 = arith.constant 0 : i32
    return %c0_i32, %c0_i32_0 : i32, i32
  }
  func.func @transform_2(%arg0: i32) -> (i32, i32) {
    %c0_i32 = arith.constant 0 : i32
    %c0_i32_0 = arith.constant 0 : i32
    %c0_i32_1 = arith.constant 0 : i32
    return %c0_i32, %c0_i32_0 : i32, i32
  }
  func.func @transform_3(%arg0: i32) -> (i32, i32) {
    %c0_i32 = arith.constant 0 : i32
    %c0_i32_0 = arith.constant 0 : i32
    %c0_i32_1 = arith.constant 0 : i32
    return %c0_i32, %c0_i32_0 : i32, i32
  }
  func.func @transform_4(%arg0: i32) -> (i32, i32) {
    %c0_i32 = arith.constant 0 : i32
    %c0_i32_0 = arith.constant 0 : i32
    %c0_i32_1 = arith.constant 0 : i32
    return %c0_i32, %c0_i32_0 : i32, i32
  }
  func.func @transform_5(%arg0: i32) -> (i32, i32) {
    %c0_i32 = arith.constant 0 : i32
    %c0_i32_0 = arith.constant 0 : i32
    %c0_i32_1 = arith.constant 0 : i32
    return %c0_i32, %c0_i32_0 : i32, i32
  }
  func.func @transform_6(%arg0: i32) -> (i32, i32) {
    %c0_i32 = arith.constant 0 : i32
    %c0_i32_0 = arith.constant 0 : i32
    %c0_i32_1 = arith.constant 0 : i32
    return %c0_i32, %c0_i32_0 : i32, i32
  }
  func.func @transform_7(%arg0: i32) -> (i32, i32) {
    %c0_i32 = arith.constant 0 : i32
    %c0_i32_0 = arith.constant 0 : i32
    %c0_i32_1 = arith.constant 0 : i32
    return %c0_i32, %c0_i32_0 : i32, i32
  }
  func.func @transform_8(%arg0: i32) -> (i32, i32) {
    %c0_i32 = arith.constant 0 : i32
    %c0_i32_0 = arith.constant 0 : i32
    %c0_i32_1 = arith.constant 0 : i32
    return %c0_i32, %c0_i32_0 : i32, i32
  }
  func.func @transform_9(%arg0: i32) -> (i32, i32) {
    %c0_i32 = arith.constant 0 : i32
    %c0_i32_0 = arith.constant 0 : i32
    %c0_i32_1 = arith.constant 0 : i32
    return %c0_i32, %c0_i32_0 : i32, i32
  }
  func.func @transform_10(%arg0: i32) -> (i32, i32) {
    %c0_i32 = arith.constant 0 : i32
    %c0_i32_0 = arith.constant 0 : i32
    return %c0_i32, %arg0 : i32, i32
  }
}

</mosaic_0001>

<bundles_post_ra>
// kernel: tpu_custom_call.1
= control target key start
LH: loop header
LB: loop body
LE: loop exit
PB: predicated region body
PF: predicated region fallthrough
CT: control target
= control target key end

     0   :  { %15 = vsyncpa [#allocation3], 0  ;;  %s1759_s0 = inlined_call_operand.vmem [shape: f32[256,32], index: 0, kind: input, shape index: {}]   ;;  %s1760_s1 = inlined_call_operand.vmem [shape: bf16[64,32], index: 1, kind: input, shape index: {}]   ;;  %s1761_s2 = inlined_call_operand.vmem [shape: f32[64,1], index: 2, kind: input, shape index: {}]   ;;  %s1762_s3 = inlined_call_operand.vmem [shape: bf16[64,64], index: 3, kind: input, shape index: {}]   ;;  %s1763_s4 = inlined_call_operand.vmem [shape: f32[64,1], index: 4, kind: input, shape index: {}]   ;;  %s1764_s5 = inlined_call_operand.vmem [shape: bf16[64,64], index: 5, kind: input, shape index: {}]   ;;  %s1765_s6 = inlined_call_operand.vmem [shape: f32[64,1], index: 6, kind: input, shape index: {}]   ;;  %s1766_s7 = inlined_call_operand.vmem [shape: bf16[32,64], index: 7, kind: input, shape index: {}]   ;;  %s1767_s8 = inlined_call_operand.vmem [shape: f32[32,1], index: 8, kind: input, shape index: {}]   ;;  %s1768_s9 = inlined_call_operand.vmem [shape: f32[32,1], index: 9, kind: input, shape index: {}]   ;;  %s1769_s10 = inlined_call_operand.hbm [shape: f32[1,256], index: 10, kind: output, shape index: {}]  }
   0x1   :  { %17 = vsyncpa [#allocation3 + $0x1], 0  ;;  %s1457_s13 = smov 0   ;;  %s1459_s14 = smov 0  }
   0x2   :  { %s1461_s15 = smov 0   ;;  %s1463_s16 = smov 0  }
   0x3 LB: > { %s1129_s17 = sadd.s32 4294967295, %s1398_s16   ;;  %s1130_s18 = sadd.s32 4294967294, %s1398_s16   ;;  %s1398_s16 = sphi %s1463_s16, %s1775_s16   ;;  %s1394_s15 = sphi %s1461_s15, %s1774_s15   ;;  %s1390_s14 = sphi %s1459_s14, %s1773_s14   ;;  %s1386_s13 = sphi %s1457_s13, %s1772_s13  }
   0x4   : > { %s1480_s19 = sadd.s32 1, %s1398_s16   ;;  %s245_s20 = sadd.s32 1, %s1394_s15 }
   0x5   : > { %s242_s21 = ssub.s32 %s1398_s16, %s1480_s19  ;;  %p255_p0 = scmp.ne.s32.totalorder %s1394_s15, %s1390_s14 }
   0x6   : > { %p243_p1 = scmp.eq.s32.totalorder %s242_s21, 0  ;;  %p256_p2 = scmp.eq.s32.totalorder %s1129_s17, 1 }
   0x7   : > { %p261_p3 = scmp.ne.s32.totalorder %s1390_s14, %s1386_s13  ;;  %p262_p4 = scmp.eq.s32.totalorder %s1130_s18, 1 }
   0x8   : > { %s1490_s22 = scalar_select %p243_p1, %s1394_s15, %s245_s20  }
   0x9   : > { %p1492_p5 = por %p256_p2, %p255_p0  ;;  %p1496_p6 = por %p262_p4, %p261_p3 }
   0xa   : > { %p1133_p7 = scmp.ge.s32.totalorder %s1398_s16, 1  ;;  %p316_p8 = scmp.lt.s32.totalorder %s1398_s16, 3 }
   0xc   : > { %p317_p9 = pnand %p1133_p7, %p316_p8 }
   0xd   : > { %s1502_s25 = sshll.u32 (!%p317_p9), %s1129_s17, 4  ;;  %s351_s29 = sand.u32 (!%p317_p9), 1, %s1390_s14  }
   0xe   : > { %320 = sbr.rel (%p317_p9) target bundleno = 1041 (0x411), region = 60  ;;  %p354_p10 = scmp.lt.s32.totalorder (!%p317_p9), %s1502_s25, 31 }
   0xf   : > { %s1724_s17 = scalar_lea.hbm (!%p317_p9), %s1769_s10, %s1502_s25  ;;  %s1063_s18 = scalar_lea.sflag (!%p317_p9), [#allocation3], %s351_s29 }
  0x10   : > { %s1401_s26 = smov (!%p317_p9), [#allocation2]  }
  0x11   : > { %s1342_s27 = sshll.u32 (!%p317_p9), %s1401_s26, 4  ;;  %s1343_s27 = int_to_ptr.vmem [resolvable:$false] %s1342_s27 }
  0x13   : > { %v1320_v0 = vld [vmem:[%s1760_s1] sm:$0xff]   ;;  %vm460_vm0 = vcmask 261120   ;;  %s355_s28 = scalar_select %p354_p10, %s1502_s25, 31  ;;  %v1400_v1 = vmov 0   ;;  %v398_v2 = vld [vmem:[%s1761_s2 + $0x30] sm:$0xff]  ;;  %v399_v4 = vld [vmem:[%s1761_s2 + $0x38] sm:$0xff] }
  0x14   : > { %1218 = vmatprep.mubr.msk.bf16.mxu0 %vm460_vm0, %v1320_v0  ;;  %1318 = vset.pattern.permute.xlu0 %v1400_v1  ;;  %v396_v3 = vld [vmem:[%s1761_s2 + $0x20] sm:$0xff]  ;;  %v397_v5 = vld [vmem:[%s1761_s2 + $0x28] sm:$0xff]  ;;  %v394_v13 = vld [vmem:[%s1761_s2 + $0x10] sm:$0xff]  ;;  %vm650_vm1 = vcmask 523264  }
  0x15   : > { %1319 = vset.pattern.permute.xlu1 %v1400_v1  ;;  %s1135_s11 = sshll.u32 %s355_s28, 3  ;;  %432 = vperm.xlu0 %1318, %v398_v2   ;;  %v395_v14 = vld [vmem:[%s1761_s2 + $0x18] sm:$0xff]  ;;  %v392_v17 = vld [vmem:[%s1761_s2] sm:$0xff]  ;;  %v393_v18 = vld [vmem:[%s1761_s2 + $0x8] sm:$0xff]  ;;  %s1344_s28 = scalar_lea.vmem %s1343_s27, 32 }
  0x16   : > { %s1519_s21 = scalar_lea.vmem %s1759_s0, %s1135_s11  ;;  %422 = vperm.xlu1 %1319, %v396_v3   ;;  %v588_v21 = vld [vmem:[%s1763_s4 + $0x30] sm:$0xff]  ;;  %v589_v24 = vld [vmem:[%s1763_s4 + $0x38] sm:$0xff]  ;;  %v586_v26 = vld [vmem:[%s1763_s4 + $0x20] sm:$0xff] }
  0x17   : > { %v374_v6 = vld [vmem:[%s1519_s21 + $0x70] sm:$0xff]  ;;  %v375_v7 = vld [vmem:[%s1519_s21 + $0x78] sm:$0xff]  ;;  %v372_v8 = vld [vmem:[%s1519_s21 + $0x60] sm:$0xff] }
  0x18   : > { %v383_v9 = vpack.c.bf16 %v375_v7, %v374_v6  ;;  %v373_v10 = vld [vmem:[%s1519_s21 + $0x68] sm:$0xff]  ;;  %v370_v15 = vld [vmem:[%s1519_s21 + $0x50] sm:$0xff]  ;;  %v371_v16 = vld [vmem:[%s1519_s21 + $0x58] sm:$0xff] }
  0x19   : > { %v382_v11 = vpack.c.bf16 %v373_v10, %v372_v8  ;;  %437 = vperm.xlu0 %1318, %v399_v4   ;;  %v381_v20 = vpack.c.bf16 %v371_v16, %v370_v15  ;;  %v368_v22 = vld [vmem:[%s1519_s21 + $0x40] sm:$0xff]  ;;  %v369_v23 = vld [vmem:[%s1519_s21 + $0x48] sm:$0xff]  ;;  %v584_v29 = vld [vmem:[%s1763_s4 + $0x10] sm:$0xff] }
  0x1a   : > { %1270 = vmatprep.subr.msk.bf16.mxu0 %vm460_vm0, %v383_v9  ;;  %v495_v12 = vsel %vm460_vm0, %v383_v9, 0  ;;  %427 = vperm.xlu1 %1319, %v397_v5   ;;  %v587_v27 = vld [vmem:[%s1763_s4 + $0x28] sm:$0xff]  ;;  %v380_v28 = vpack.c.bf16 %v369_v23, %v368_v22  ;;  %v585_v30 = vld [vmem:[%s1763_s4 + $0x18] sm:$0xff]  ;;  %v366_v31 = vld [vmem:[%s1519_s21 + $0x30] sm:$0xff] }
  0x1b   : > { %1203 = vmatpush3.bf16.xpose.msra.mxu0 %v495_v12  ;;  %v492_v19 = vsel %vm460_vm0, %v382_v11, 0  ;;  %v489_v25 = vsel %vm460_vm0, %v381_v20, 0  ;;  %v367_v32 = vld [vmem:[%s1519_s21 + $0x38] sm:$0xff]  ;;  %v582_v33 = vld [vmem:[%s1763_s4] sm:$0xff]  ;;  %v583_v34 = vld [vmem:[%s1763_s4 + $0x8] sm:$0xff] }
  0x1c   : > { %1271 = vmatprep.subr.msk.bf16.mxu0 %vm460_vm0, %v382_v11  ;;  %v486_v35 = vsel %vm460_vm0, %v380_v28, 0  ;;  %v379_v36 = vpack.c.bf16 %v367_v32, %v366_v31  ;;  %v754_v37 = vld [vmem:[%s1765_s6 + $0x30] sm:$0xff]  ;;  %v755_v38 = vld [vmem:[%s1765_s6 + $0x38] sm:$0xff]  ;;  %v364_v39 = vld [vmem:[%s1519_s21 + $0x20] sm:$0xff] }
  0x1d   : > { %412 = vperm.xlu0 %1318, %v394_v13   ;;  %v365_v40 = vld [vmem:[%s1519_s21 + $0x28] sm:$0xff]  ;;  %v752_v41 = vld [vmem:[%s1765_s6 + $0x20] sm:$0xff]  ;;  %v750_v45 = vld [vmem:[%s1765_s6 + $0x10] sm:$0xff] }
  0x1e   : > { %417 = vperm.xlu1 %1319, %v395_v14   ;;  %v753_v42 = vld [vmem:[%s1765_s6 + $0x28] sm:$0xff]  ;;  %v483_v43 = vsel %vm460_vm0, %v379_v36, 0  ;;  %v378_v44 = vpack.c.bf16 %v365_v40, %v364_v39  ;;  %v751_v46 = vld [vmem:[%s1765_s6 + $0x18] sm:$0xff]  ;;  %v362_v47 = vld [vmem:[%s1519_s21 + $0x10] sm:$0xff] }
  0x1f   : > { %v363_v48 = vld [vmem:[%s1519_s21 + $0x18] sm:$0xff]  ;;  %v748_v49 = vld [vmem:[%s1765_s6] sm:$0xff]  ;;  %v749_v50 = vld [vmem:[%s1765_s6 + $0x8] sm:$0xff] }
  0x20   : > { %v480_v51 = vsel %vm460_vm0, %v378_v44, 0  ;;  %v377_v52 = vpack.c.bf16 %v363_v48, %v362_v47  ;;  %v925_v53 = vld [vmem:[%s1767_s8] sm:$0xff]  ;;  %v926_v54 = vld [vmem:[%s1767_s8 + $0x8] sm:$0xff]  ;;  %v927_v57 = vld [vmem:[%s1767_s8 + $0x10] sm:$0xff] }
  0x21   : > { %402 = vperm.xlu0 %1318, %v392_v17   ;;  %v360_v55 = vld [vmem:[%s1519_s21] sm:$0xff]  ;;  %v361_v56 = vld [vmem:[%s1519_s21 + $0x8] sm:$0xff]  ;;  %v928_v58 = vld [vmem:[%s1767_s8 + $0x18] sm:$0xff]  ;;  %s352_s21 = scalar_lea.vmem [#allocation2], %s351_s29 }
  0x22   : > { %407 = vperm.xlu1 %1319, %v393_v18   ;;  %v477_v59 = vsel %vm460_vm0, %v377_v52, 0  ;;  %v376_v60 = vpack.c.bf16 %v361_v56, %v360_v55  ;;  %v1018_v61 = vld [vmem:[%s1768_s9] sm:$0xff]  ;;  %v1019_v62 = vld [vmem:[%s1768_s9 + $0x8] sm:$0xff]  ;;  %v1020_v63 = vld [vmem:[%s1768_s9 + $0x10] sm:$0xff]  ;;  %s1075_s30 = sshll.u32 %s352_s21, 4  ;;  %s1076_s30 = int_to_ptr.vmem [resolvable:$true] %s1075_s30 }
  0x23   : > { %1205 = vmatpush3.bf16.xpose.msra.mxu0 %v492_v19  ;;  %v1021_v0 = vld [vmem:[%s1768_s9 + $0x18] sm:$0xff]  ;;  %v1321_v2 = vld [vmem:[%s1760_s1 + $0x8] sm:$0xff]   ;;  %v1322_v3 = vld [vmem:[%s1760_s1 + $0x10] sm:$0xff]   ;;  %s1338_s20 = scalar_lea.vmem %s1076_s30, 16  ;;  %p1345_p0 = scmp.lt.s32.totalorder %s1076_s30, %s1343_s27 }
  0x24   : > { %1272 = vmatprep.subr.msk.bf16.mxu0 %vm460_vm0, %v381_v20  ;;  %v474_v1 = vsel %vm460_vm0, %v376_v60, 0  ;;  %v1323_v4 = vld [vmem:[%s1760_s1 + $0x18] sm:$0xff]   ;;  %v1324_v5 = vld [vmem:[%s1762_s3] sm:$0xff]   ;;  %p1339_p11 = scmp.ne.s32.totalorder %s1076_s30, %s1338_s20  ;;  %p1346_p1 = scmp.lt.s32.totalorder %s1344_s28, %s1338_s20 }
  0x25   : > { %622 = vperm.xlu0 %1318, %v588_v21   ;;  %1234 = vmatprep.mubr.msk.bf16.mxu1 %vm650_vm1, %v1324_v5 }
  0x26   : > { %627 = vperm.xlu1 %1319, %v589_v24   ;;  %p1340_p12 = pnand %p1339_p11, %p1492_p5  ;;  %p1347_p2 = por %p1346_p1, %p1345_p0 }
  0x28   : > { %p1341_p13 = pneg %p1340_p12 }
  0x29   : > { %612 = vperm.xlu0 %1318, %v586_v26  }
  0x2a   : > { %617 = vperm.xlu1 %1319, %v587_v27   ;;  %p1348_p3 = pnand %p1347_p2, %p1341_p13 }
  0x2b   : > { %1207 = vmatpush3.bf16.xpose.msra.mxu0 %v489_v25 }
  0x2c   : > { %1273 = vmatprep.subr.msk.bf16.mxu0 %vm460_vm0, %v380_v28 }
  0x2d   : > { %602 = vperm.xlu0 %1318, %v584_v29  }
  0x2e   : > { %607 = vperm.xlu1 %1319, %v585_v30  }
  0x31   : > { %592 = vperm.xlu0 %1318, %v582_v33  }
  0x32   : > { %597 = vperm.xlu1 %1319, %v583_v34  }
  0x33   : > { %1209 = vmatpush3.bf16.xpose.msra.mxu0 %v486_v35 }
  0x34   : > { %1274 = vmatprep.subr.msk.bf16.mxu0 %vm460_vm0, %v379_v36 }
  0x35   : > { %788 = vperm.xlu0 %1318, %v754_v37  }
  0x36   : > { %793 = vperm.xlu1 %1319, %v755_v38  }
  0x39   : > { %778 = vperm.xlu0 %1318, %v752_v41  }
  0x3a   : > { %783 = vperm.xlu1 %1319, %v753_v42   ;;  %v1325_v42 = vld [vmem:[%s1762_s3 + $0x8] sm:$0xff]  }
  0x3b   : > { %1211 = vmatpush3.bf16.xpose.msra.mxu0 %v483_v43  ;;  %v1326_v43 = vld [vmem:[%s1762_s3 + $0x10] sm:$0xff]  }
  0x3c   : > { %1275 = vmatprep.subr.msk.bf16.mxu0 %vm460_vm0, %v378_v44  ;;  %v1327_v44 = vld [vmem:[%s1762_s3 + $0x18] sm:$0xff]  }
  0x3d   : > { %768 = vperm.xlu0 %1318, %v750_v45   ;;  %v1328_v45 = vld [vmem:[%s1764_s5] sm:$0xff]  }
  0x3e   : > { %773 = vperm.xlu1 %1319, %v751_v46  }
  0x41   : > { %758 = vperm.xlu0 %1318, %v748_v49  }
  0x42   : > { %763 = vperm.xlu1 %1319, %v749_v50  }
  0x43   : > { %1213 = vmatpush3.bf16.xpose.msra.mxu0 %v480_v51 }
  0x44   : > { %1276 = vmatprep.subr.msk.bf16.mxu0 %vm460_vm0, %v377_v52 }
  0x45   : > { %931 = vperm.xlu0 %1318, %v925_v53  }
  0x46   : > { %936 = vperm.xlu1 %1319, %v926_v54  }
  0x49   : > { %941 = vperm.xlu0 %1318, %v927_v57  }
  0x4a   : > { %946 = vperm.xlu1 %1319, %v928_v58  }
  0x4b   : > { %1215 = vmatpush3.bf16.xpose.msra.mxu0 %v477_v59 }
  0x4c   : > { %1277 = vmatprep.subr.msk.bf16.mxu0 %vm460_vm0, %v376_v60 }
  0x4d   : > { %1024 = vperm.xlu0 %1318, %v1018_v61  }
  0x4e   : > { %1029 = vperm.xlu1 %1319, %v1019_v62  }
  0x51   : > { %1034 = vperm.xlu0 %1318, %v1020_v63  }
  0x52   : > { %1039 = vperm.xlu1 %1319, %v1021_v0  }
  0x53   : > { %1217 = vmatpush3.bf16.xpose.msra.mxu0 %v474_v1 }
  0x5a   : > { %1219 = vmatmul.mubr.msk.bf16.vlgmr.msra.gmra.mxu0 %vm460_vm0, %v1321_v2 }
  0x5b   : > { %1222 = vmatprep.mubr.msk.bf16.mxu0 %vm460_vm0, %v1322_v3 }
  0x62   : > { %1223 = vmatmul.mubr.msk.bf16.gmra.mxu0 %vm460_vm0, %v1323_v4 }
  0x90   : > { %v433_v8 = vpop.permute.xlu0 %432 }
  0x91   : > { %v423_v6 = vpop.permute.xlu1 %422 }
  0x94   : > { %v438_v13 = vpop.permute.xlu0 %437 }
  0x95   : > { %v428_v11 = vpop.permute.xlu1 %427 }
  0x98   : > { %v413_v21 = vpop.permute.xlu0 %412 }
  0x99   : > { %v418_v17 = vpop.permute.xlu1 %417 }
  0x9c   : > { %v403_v35 = vpop.permute.xlu0 %402 }
  0x9d   : > { %v408_v31 = vpop.permute.xlu1 %407 }
  0xa0   : > { %v623_v48 = vpop.permute.xlu0 %622 }
  0xa1   : > { %v628_v46 = vpop.permute.xlu1 %627 }
  0xa4   : > { %v613_v53 = vpop.permute.xlu0 %612 }
  0xa5   : > { %v618_v51 = vpop.permute.xlu1 %617 }
  0xa8   : > { %v603_v61 = vpop.permute.xlu0 %602 }
  0xa9   : > { %v608_v57 = vpop.permute.xlu1 %607 }
 0x11a   : > { %v1220_v7 = vpop.f32.mrf.mxu0 }
 0x11b   : > { %v540_v27 = vadd.f32 %v1220_v7, %v413_v21  ;;  %v598_v7 = vpop.permute.xlu1 %597  ;;  %v1332_v21 = vld [vmem:[%s1766_s7] sm:$0xff]  }
 0x11c   : > { %v531_v9 = vpop.f32.mrf.mxu0 }
 0x11d   : > { %v564_v36 = vmax.f32 %v540_v27, 0.0  ;;  %v532_v37 = vadd.f32 %v531_v9, %v403_v35 }
 0x11e   : > { %v1221_v10 = vpop.f32.mrf.mxu0 }
 0x11f   : > { %v543_v23 = vadd.f32 %v1221_v10, %v418_v17  ;;  %v562_v40 = vmax.f32 %v532_v37, 0.0 }
 0x120   : > { %v534_v12 = vpop.f32.mrf.mxu0 }
 0x121   : > { %v565_v32 = vmax.f32 %v543_v23, 0.0  ;;  %v535_v33 = vadd.f32 %v534_v12, %v408_v31 }
 0x122   : > { %v1224_v14 = vpop.f32.mrf.mxu0 }
 0x123   : > { %v556_v16 = vadd.f32 %v1224_v14, %v433_v8  ;;  %v1666_v38 = vpack.c.bf16 %v565_v32, %v564_v36  ;;  %v563_v39 = vmax.f32 %v535_v33, 0.0 }
 0x124   : > { %v547_v15 = vpop.f32.mrf.mxu0 }
 0x125   : > { %v548_v19 = vadd.f32 %v547_v15, %v423_v6  ;;  %v568_v24 = vmax.f32 %v556_v16, 0.0  ;;  %v1670_v41 = vpack.c.bf16 %v563_v39, %v562_v40 }
 0x126   : > { %v1225_v18 = vpop.f32.mrf.mxu0 }
 0x127   : > { %v559_v20 = vadd.f32 %v1225_v18, %v438_v13  ;;  %v566_v28 = vmax.f32 %v548_v19, 0.0  ;;  %v1329_v18 = vld [vmem:[%s1764_s5 + $0x8] sm:$0xff]   ;;  %v1330_v19 = vld [vmem:[%s1764_s5 + $0x10] sm:$0xff]  }
 0x128   : > { %v550_v22 = vpop.f32.mrf.mxu0 }
 0x129   : > { %v569_v25 = vmax.f32 %v559_v20, 0.0  ;;  %v551_v26 = vadd.f32 %v550_v22, %v428_v11  ;;  %v593_v11 = vpop.permute.xlu0 %592  ;;  %v1331_v20 = vld [vmem:[%s1764_s5 + $0x18] sm:$0xff]   ;;  %v794_v22 = vpop.permute.xlu1 %793 }
 0x12b   : > { %v1659_v29 = vpack.c.bf16 %v569_v25, %v568_v24  ;;  %v567_v30 = vmax.f32 %v551_v26, 0.0 }
 0x12d   : > { %v1661_v34 = vpack.c.bf16 %v567_v30, %v566_v28  ;;  %1226 = vmatprep.subr.bf16.mxu1 %v1659_v29  ;;  %v789_v23 = vpop.permute.xlu0 %788  ;;  %v784_v26 = vpop.permute.xlu1 %783  ;;  %v899_v36 = vunpack.c.l.bf16 %v1659_v29 }
 0x12e   : > { %1227 = vmatpush3.bf16.msra.mxu1 %v1659_v29 }
 0x12f   : > { %1228 = vmatprep.subr.bf16.mxu1 %v1661_v34 }
 0x131   : > { %v779_v28 = vpop.permute.xlu0 %778  ;;  %v774_v33 = vpop.permute.xlu1 %773 }
 0x132   : > { %1229 = vmatpush3.bf16.msra.mxu1 %v1661_v34 }
 0x133   : > { %1230 = vmatprep.subr.bf16.mxu1 %v1666_v38 }
 0x135   : > { %v769_v39 = vpop.permute.xlu0 %768 }
 0x136   : > { %1231 = vmatpush3.bf16.msra.mxu1 %v1666_v38 }
 0x137   : > { %1232 = vmatprep.subr.bf16.mxu1 %v1670_v41 }
 0x13a   : > { %1233 = vmatpush3.bf16.msra.mxu1 %v1670_v41 }
 0x13d   : > { %1235 = vmatmul.mubr.msk.bf16.vlgmr.msra.gmra.mxu1 %vm650_vm1, %v1325_v42 }
 0x13e   : > { %1238 = vmatprep.mubr.msk.bf16.mxu1 %vm650_vm1, %v1326_v43 }
 0x145   : > { %1239 = vmatmul.mubr.msk.bf16.gmra.mxu1 %vm650_vm1, %v1327_v44  ;;  %v897_v44 = vunpack.c.l.bf16 %v1661_v34 }
 0x146   : > { %1250 = vmatprep.mubr.msk.bf16.mxu1 %vm650_vm1, %v1328_v45 }
 0x1fd   : > { %v1236_v47 = vpop.f32.mrf.mxu1 }
 0x1fe   : > { %v706_v3 = vadd.f32 %v1236_v47, %v603_v61  ;;  %v759_v61 = vpop.permute.xlu0 %758 }
 0x1ff   : > { %v697_v49 = vpop.f32.mrf.mxu1 }
 0x200   : > { %v730_v12 = vmax.f32 %v706_v3, 0.0  ;;  %v698_v13 = vadd.f32 %v697_v49, %v593_v11  ;;  %v893_v3 = vunpack.c.l.bf16 %v1670_v41 }
 0x201   : > { %v1237_v50 = vpop.f32.mrf.mxu1 }
 0x202   : > { %v709_v63 = vadd.f32 %v1237_v50, %v608_v57  ;;  %v728_v16 = vmax.f32 %v698_v13, 0.0  ;;  %v932_v11 = vpop.permute.xlu0 %931 }
 0x203   : > { %v700_v52 = vpop.f32.mrf.mxu1 }
 0x204   : > { %v731_v8 = vmax.f32 %v709_v63, 0.0  ;;  %v701_v9 = vadd.f32 %v700_v52, %v598_v7 }
 0x205   : > { %v1240_v54 = vpop.f32.mrf.mxu1 }
 0x206   : > { %v722_v56 = vadd.f32 %v1240_v54, %v623_v48  ;;  %v737_v14 = vpack.c.bf16 %v731_v8, %v730_v12  ;;  %v729_v15 = vmax.f32 %v701_v9, 0.0  ;;  %v896_v48 = vunpack.c.h.bf16 %v1666_v38  ;;  %v764_v54 = vpop.permute.xlu1 %763  ;;  %v942_v13 = vpop.permute.xlu0 %941 }
 0x207   : > { %v713_v55 = vpop.f32.mrf.mxu1 }
 0x208   : > { %v714_v59 = vadd.f32 %v713_v55, %v613_v53  ;;  %v734_v0 = vmax.f32 %v722_v56, 0.0  ;;  %v736_v17 = vpack.c.bf16 %v729_v15, %v728_v16  ;;  %v898_v53 = vunpack.c.h.bf16 %v1661_v34 }
 0x209   : > { %v1241_v58 = vpop.f32.mrf.mxu1  ;;  %v895_v55 = vunpack.c.l.bf16 %v1666_v38 }
 0x20a   : > { %v725_v60 = vadd.f32 %v1241_v58, %v628_v46  ;;  %v732_v4 = vmax.f32 %v714_v59, 0.0  ;;  %v900_v46 = vunpack.c.h.bf16 %v1659_v29  ;;  %v894_v29 = vunpack.c.h.bf16 %v1670_v41  ;;  %v1333_v41 = vld [vmem:[%s1766_s7 + $0x8] sm:$0xff]   ;;  %v937_v12 = vpop.permute.xlu1 %936 }
 0x20b   : > { %v716_v62 = vpop.f32.mrf.mxu1 }
 0x20c   : > { %v735_v1 = vmax.f32 %v725_v60, 0.0  ;;  %v717_v2 = vadd.f32 %v716_v62, %v618_v51 }
 0x20e   : > { %v739_v5 = vpack.c.bf16 %v735_v1, %v734_v0  ;;  %v733_v6 = vmax.f32 %v717_v2, 0.0  ;;  %v947_v15 = vpop.permute.xlu1 %946 }
 0x210   : > { %v738_v10 = vpack.c.bf16 %v733_v6, %v732_v4  ;;  %1242 = vmatprep.subr.bf16.mxu1 %v739_v5 }
 0x211   : > { %1243 = vmatpush3.bf16.msra.mxu1 %v739_v5 }
 0x212   : > { %1244 = vmatprep.subr.bf16.mxu1 %v738_v10 }
 0x215   : > { %1245 = vmatpush3.bf16.msra.mxu1 %v738_v10 }
 0x216   : > { %1246 = vmatprep.subr.bf16.mxu1 %v737_v14 }
 0x219   : > { %1247 = vmatpush3.bf16.msra.mxu1 %v737_v14 }
 0x21a   : > { %1248 = vmatprep.subr.bf16.mxu1 %v736_v17 }
 0x21d   : > { %1249 = vmatpush3.bf16.msra.mxu1 %v736_v17 }
 0x220   : > { %1251 = vmatmul.mubr.msk.bf16.vlgmr.msra.gmra.mxu1 %vm650_vm1, %v1329_v18 }
 0x221   : > { %1254 = vmatprep.mubr.msk.bf16.mxu1 %vm650_vm1, %v1330_v19 }
 0x228   : > { %1255 = vmatmul.mubr.msk.bf16.gmra.mxu1 %vm650_vm1, %v1331_v20  ;;  %v1025_v20 = vpop.permute.xlu0 %1024 }
 0x229   : > { %1266 = vmatprep.mubr.msk.bf16.mxu1 %vm650_vm1, %v1332_v21 }
 0x2e0   : > { %v1252_v24 = vpop.f32.mrf.mxu1 }
 0x2e1   : > { %v871_v47 = vadd.f32 %v1252_v24, %v769_v39 }
 0x2e2   : > { %v862_v25 = vpop.f32.mrf.mxu1 }
 0x2e3   : > { %v903_v62 = vadd.f32 %v895_v55, %v871_v47  ;;  %v863_v63 = vadd.f32 %v862_v25, %v759_v61  ;;  %v1030_v25 = vpop.permute.xlu1 %1029 }
 0x2e4   : > { %v1253_v27 = vpop.f32.mrf.mxu1 }
 0x2e5   : > { %v874_v40 = vadd.f32 %v1253_v27, %v774_v33  ;;  %v911_v38 = vmax.f32 %v903_v62, 0.0  ;;  %v901_v6 = vadd.f32 %v893_v3, %v863_v63 }
 0x2e6   : > { %v865_v30 = vpop.f32.mrf.mxu1 }
 0x2e7   : > { %v904_v56 = vadd.f32 %v896_v48, %v874_v40  ;;  %v866_v57 = vadd.f32 %v865_v30, %v764_v54  ;;  %v909_v9 = vmax.f32 %v901_v6, 0.0 }
 0x2e8   : > { %v1256_v31 = vpop.f32.mrf.mxu1 }
 0x2e9   : > { %v887_v32 = vadd.f32 %v1256_v31, %v789_v23  ;;  %v912_v4 = vmax.f32 %v904_v56, 0.0  ;;  %v902_v34 = vadd.f32 %v894_v29, %v866_v57 }
 0x2ea   : > { %v878_v35 = vpop.f32.mrf.mxu1 }
 0x2eb   : > { %v879_v37 = vadd.f32 %v878_v35, %v779_v28  ;;  %v907_v43 = vadd.f32 %v899_v36, %v887_v32  ;;  %v910_v7 = vmax.f32 %v902_v34, 0.0  ;;  %v918_v8 = vpack.c.bf16 %v912_v4, %v911_v38  ;;  %v1035_v32 = vpop.permute.xlu0 %1034  ;;  %v1040_v36 = vpop.permute.xlu1 %1039 }
 0x2ec   : > { %v1257_v42 = vpop.f32.mrf.mxu1 }
 0x2ed   : > { %v890_v45 = vadd.f32 %v1257_v42, %v794_v22  ;;  %v905_v50 = vadd.f32 %v897_v44, %v879_v37  ;;  %v915_v58 = vmax.f32 %v907_v43, 0.0  ;;  %v917_v10 = vpack.c.bf16 %v910_v7, %v909_v9 }
 0x2ee   : > { %v881_v49 = vpop.f32.mrf.mxu1 }
 0x2ef   : > { %v908_v51 = vadd.f32 %v900_v46, %v890_v45  ;;  %v882_v52 = vadd.f32 %v881_v49, %v784_v26  ;;  %v913_v0 = vmax.f32 %v905_v50, 0.0 }
 0x2f1   : > { %v916_v59 = vmax.f32 %v908_v51, 0.0  ;;  %v906_v60 = vadd.f32 %v898_v53, %v882_v52 }
 0x2f3   : > { %v914_v1 = vmax.f32 %v906_v60, 0.0  ;;  %v920_v2 = vpack.c.bf16 %v916_v59, %v915_v58 }
 0x2f5   : > { %1258 = vmatprep.subr.bf16.mxu1 %v920_v2  ;;  %v919_v5 = vpack.c.bf16 %v914_v1, %v913_v0 }
 0x2f6   : > { %1259 = vmatpush3.bf16.msra.mxu1 %v920_v2 }
 0x2f7   : > { %1260 = vmatprep.subr.bf16.mxu1 %v919_v5 }
 0x2fa   : > { %1261 = vmatpush3.bf16.msra.mxu1 %v919_v5 }
 0x2fb   : > { %1262 = vmatprep.subr.bf16.mxu1 %v918_v8 }
 0x2fe   : > { %1263 = vmatpush3.bf16.msra.mxu1 %v918_v8 }
 0x2ff   : > { %1264 = vmatprep.subr.bf16.mxu1 %v917_v10 }
 0x302   : > { %1265 = vmatpush3.bf16.msra.mxu1 %v917_v10 }
 0x305   : > { %1267 = vmatmul.mubr.msk.bf16.vlgmr.msra.gmra.mxu1 %vm650_vm1, %v1333_v41 }
 0x3c5   : > { %v1268_v14 = vpop.f32.mrf.mxu1 }
 0x3c6   : > { %v1008_v19 = vadd.f32 %v1268_v14, %v942_v13 }
 0x3c7   : > { %v999_v16 = vpop.f32.mrf.mxu1 }
 0x3c8   : > { %v1000_v17 = vadd.f32 %v999_v16, %v932_v11  ;;  %v1016_v26 = vmax.f32 %v1008_v19, 0.0 }
 0x3c9   : > { %v1269_v18 = vpop.f32.mrf.mxu1 }
 0x3ca   : > { %v1014_v22 = vmax.f32 %v1000_v17, 0.0  ;;  %v1011_v23 = vadd.f32 %v1269_v18, %v947_v15  ;;  %v1044_v33 = vmul.f32 %v1035_v32, %v1016_v26 }
 0x3cb   : > { %v1002_v21 = vpop.f32.mrf.mxu1 }
 0x3cc   : > { %v1003_v24 = vadd.f32 %v1002_v21, %v937_v12  ;;  %v1042_v28 = vmul.f32 %v1025_v20, %v1014_v22  ;;  %v1017_v30 = vmax.f32 %v1011_v23, 0.0 }
 0x3ce   : > { %v1015_v27 = vmax.f32 %v1003_v24, 0.0  ;;  %v1045_v37 = vmul.f32 %v1040_v36, %v1017_v30 }
 0x3d0   : > { %v1043_v31 = vmul.f32 %v1030_v25, %v1015_v27 }
 0x3d2   : > { %v1046_v35 = vadd.f32 %v1043_v31, %v1042_v28 }
 0x3d4   : > { %v1047_v39 = vadd.f32 %v1046_v35, %v1044_v33 }
 0x3d6   : > { %v1048_v40 = vadd.f32 %v1047_v39, %v1045_v37 }
 0x3d8   : > { %v1049_v42 = vrot.slane %v1048_v40, 4 }
 0x3da   : > { %v1050_v43 = vadd.f32 %v1049_v42, %v1048_v40 }
 0x3dc   : > { %v1051_v44 = vrot.slane %v1050_v43, 2 }
 0x3de   : > { %v1052_v45 = vadd.f32 %v1051_v44, %v1050_v43 }
 0x3e0   : > { %v1053_v46 = vrot.slane %v1052_v45, 1 }
 0x3e2   : > { %v1054_v47 = vadd.f32 %v1053_v46, %v1052_v45 }
 0x3e4   : > { %v1164_v48 = vmul.f32 -1.442695, %v1054_v47 }
 0x3e6   : > { %1334 = vpow2.f32 %v1164_v48 }
 0x3f3   : > { %v1335_v49 = vpop.eup %1334 }
 0x3f4   : > { %v1058_v50 = vadd.f32 1.0, %v1335_v49 }
 0x3f6   : > { %1336 = vrcp.f32 %v1058_v50 }
 0x403   : > { %v1337_v51 = vpop.eup %1336 }
 0x404   : > { %1061 = vst [vmem:[%s352_s21] sm:$0x1] %v1337_v51 }
 0x405   : > { %1351 = shalt.err (!%p1348_p3)
}
 0x406   : > { %s1352_s25 = scalar_lea.hbm %s1724_s17, 16  ;;  %s1356_s11 = scalar_lea.hbm %s1769_s10, 32 }
 0x407   : > { %p1353_p4 = scmp.ne.s32.totalorder %s1724_s17, %s1352_s25  ;;  %p1357_p9 = scmp.lt.s32.totalorder %s1724_s17, %s1769_s10 }
 0x408   : > { %p1358_p10 = scmp.lt.s32.totalorder %s1356_s11, %s1352_s25 }
 0x409   : > { %p1354_p7 = pnand %p1353_p4, %p1492_p5 }
 0x40a   : > { %p1359_p11 = por %p1358_p10, %p1357_p9 }
 0x40b   : > { %p1355_p8 = pneg %p1354_p7 }
 0x40d   : > { %p1360_p12 = pnand %p1359_p11, %p1355_p8 }
 0x40f   : > { %1363 = shalt.err (!%p1360_p12)
}
 0x410   : > { %1278 = dma.vmem_to_hbm [thread:$0]  (%p1492_p5), %s1076_s30, 16, %s1724_s17, %s1063_s18  }
 0x411 PF: > { %p1284_p13 = scmp.ge.s32.totalorder %s1398_s16, 2  ;;  %s1087_s20 = sand.u32 1, %s1386_s13  }
 0x412   : > { %s1088_s27 = scalar_lea.sflag [#allocation3], %s1087_s20 }
 0x413   : > { %p1281_p0 = pnand %p1284_p13, %p1496_p6 }
 0x415   : > { %p1282_p1 = pneg %p1281_p0 }
 0x417   : > { %1381 = dma.done.wait (%p1282_p1), %s1088_s27, 16  }
 0x418   : > { %1383 = vsyncadd (%p1282_p1), %s1088_s27, 4294967280  ;;  %p20_p2 = scmp.ge.s32.totalorder %s1480_s19, 4   ;;  %s1772_s13 = smov %s1390_s14 }
 0x419   : > { %s1773_s14 = smov %s1394_s15  ;;  %s1774_s15 = smov %s1490_s22 }
 0x41a   : > { %s1775_s16 = smov %s1480_s19  ;;  %22 = sbr.rel (!%p20_p2) target bundleno = 3 (0x3), region = 95 }
 0x41f   :  { %1092 = vsyncpa [#allocation3], 1 }
 0x420   :  { %1094 = vsyncpa [#allocation3 + $0x1], 1 }

</bundles_post_ra>
